<compile_context>
chip_gen: v6e
topology: v6e:2x2x1
jax: 0.10.0
libtpu: 0.0.40
codegen_flags: <defaults>
</compile_context>

<pallas_src>
import jax
import jax.numpy as jnp
from jax.experimental import pallas as pl
from jax.experimental.pallas import tpu as pltpu

# ----- small, deterministic hyperparameters consistent with the module -----
VOCAB_SIZE = 50
EMBED_DIM = 32          # embedding_dim
NUM_CLASSES = 4         # num_classes
NUM_FILTERS = 16        # num_filters
FILTER_SIZES = (3, 4, 5)
FS_MAX = max(FILTER_SIZES)
FEAT_DIM = len(FILTER_SIZES) * NUM_FILTERS   # 48
BATCH = 2
SEQ_LEN = 16

# Packed-slab layout constants (everything padded to 128 lanes).
FEAT_PAD = 128                                # conv-output / FC lanes, padded
TAB_ROWS = 128                                # rows per bf16 slab block
ROW_BCONV = 0                                 # f32 slab: conv bias row
ROW_FCW = 8                                   # f32 slab: fc weight^T rows
ROW_FCB = ROW_FCW + FEAT_PAD                  # 136: fc bias row
ROW_MASK = ((ROW_FCB + 1 + 7) // 8) * 8       # 144: pooling mask rows
F32_ROWS = ROW_MASK + BATCH * SEQ_LEN         # 176


def cnn_kernel(ids_ref, p16_ref, p32_ref, out_ref):
    """Whole-array VMEM tiles (everything is tiny and fully resident).

    ids_ref : (B*L, 1)                 int32     flattened token ids
    p16_ref : ((1+FS_MAX)*128, 128)    bfloat16  [table ; W_tap0 ; ... ; W_tap4]
              rows [0:V, 0:E] = embedding table, block (1+k): rows [0:E] hold
              tap-k conv weights W_k[e, f] (zero for taps >= filter size)
    p32_ref : (F32_ROWS, 128)          float32   conv bias / fc^T / fc bias /
                                                 precomputed pooling mask
    out_ref : (B, 128)                 float32   logits in lanes [0:C], rest 0
    """
    B, FP = out_ref.shape
    BL = ids_ref.shape[0]
    L = BL // B

    # ---- fused embedding gather: one-hot (B*L,128) @ table (128,128) on MXU.
    onehot = jnp.where(
        jax.lax.broadcasted_iota(jnp.int32, (BL, TAB_ROWS), 1) == ids_ref[...],
        1.0, 0.0).astype(jnp.bfloat16)
    emb = jnp.dot(onehot, p16_ref[0:TAB_ROWS, :],
                  preferred_element_type=jnp.float32)        # (BL,128) f32 (exact bf16 rows)

    # ---- Conv1d's via tap accumulation: XLU roll + one small MXU matmul per
    # tap (no im2col slab, no unaligned slices, no 160-lane concat).
    # shift = BL-k  ==  jnp.roll(emb, -k, 0): row t reads emb[t+k]; wraparound
    # and cross-item rows only land in positions the pooling mask zeroes, and
    # tap weights for k >= filter_size are zero, so the result is exact.
    y = jnp.dot(emb.astype(jnp.bfloat16), p16_ref[TAB_ROWS:2 * TAB_ROWS, :],
                preferred_element_type=jnp.float32)          # tap 0
    for k in range(1, FS_MAX):                               # static unroll
        ek = pltpu.roll(emb, BL - k, axis=0).astype(jnp.bfloat16)
        wk = p16_ref[(1 + k) * TAB_ROWS:(2 + k) * TAB_ROWS, :]
        y = y + jnp.dot(ek, wk, preferred_element_type=jnp.float32)

    # ---- bias + ReLU (f32 VPU, v5e-safe), precomputed pool mask, max pool.
    y = jnp.maximum(y + p32_ref[ROW_BCONV:ROW_BCONV + 1, :], 0.0)   # (BL,128)
    y = y * p32_ref[ROW_MASK:ROW_MASK + BL, :]                      # mask partial windows
    pooled = jnp.max(y.reshape(B, L, FP), axis=1)                   # (B,128) implicit concat

    # ---- dropout(p=0.5) is identity in eval mode; final Linear.
    logits = jnp.dot(pooled, p32_ref[ROW_FCW:ROW_FCW + FEAT_PAD, :],
                     preferred_element_type=jnp.float32)
    out_ref[...] = logits + p32_ref[ROW_FCB:ROW_FCB + 1, :]


def _pack_params(emb_table, conv_ws, conv_bs, fc_w, fc_b):
    """Re-layout PyTorch parameters into 2 lane-dense slabs (1 bf16, 1 f32)."""
    # --- bf16 slab: [table ; W_tap0 ; ... ; W_tap{FS_MAX-1}], 128 rows each.
    slab16 = jnp.zeros(((1 + FS_MAX) * TAB_ROWS, FEAT_PAD), jnp.float32)
    slab16 = slab16.at[:VOCAB_SIZE, :EMBED_DIM].set(emb_table)
    col = 0
    for w, fs in zip(conv_ws, FILTER_SIZES):
        for k in range(fs):
            rows = (1 + k) * TAB_ROWS
            # Conv1d weight (F, E, fs): tap-k block [e, f] = w[f, e, k]
            slab16 = slab16.at[rows:rows + EMBED_DIM,
                               col:col + NUM_FILTERS].set(jnp.transpose(w[:, :, k]))
        col += NUM_FILTERS
    slab16 = slab16.astype(jnp.bfloat16)

    # --- f32 slab: conv bias / fc weight^T / fc bias / pooling mask.
    slab32 = jnp.zeros((F32_ROWS, FEAT_PAD), jnp.float32)
    slab32 = slab32.at[ROW_BCONV, :FEAT_DIM].set(jnp.concatenate(conv_bs))
    slab32 = slab32.at[ROW_FCW:ROW_FCW + FEAT_DIM, :NUM_CLASSES].set(jnp.transpose(fc_w))
    slab32 = slab32.at[ROW_FCB, :NUM_CLASSES].set(fc_b)
    # Pooling mask: position t is valid for filter size fs iff t < L - fs + 1.
    t = jnp.arange(SEQ_LEN, dtype=jnp.int32)[:, None]                     # (L,1)
    limits = jnp.repeat(
        jnp.array([SEQ_LEN - fs + 1 for fs in FILTER_SIZES], jnp.int32),
        NUM_FILTERS)                                                      # (FEAT,)
    mask = (t < limits[None, :]).astype(jnp.float32)                      # (L,FEAT)
    mask = jnp.tile(mask, (BATCH, 1))                                     # (B*L,FEAT)
    slab32 = slab32.at[ROW_MASK:ROW_MASK + BATCH * SEQ_LEN, :FEAT_DIM].set(mask)
    return slab16, slab32


def cnn_forward(token_ids, emb_table, conv_ws, conv_bs, fc_w, fc_b):
    B, L = token_ids.shape
    ids = token_ids.reshape(B * L, 1).astype(jnp.int32)
    slab16, slab32 = _pack_params(emb_table, conv_ws, conv_bs, fc_w, fc_b)

    vmem = pl.BlockSpec(memory_space=pltpu.MemorySpace.VMEM)
    # Grid-less single program: 3 input DMAs (ids + 2 packed slabs) + 1 output.
    # For non-toy batch sizes: add a leading batch grid axis with
    # dimension_semantics=("parallel",) (engages both v7x TensorCores) and
    # batch many (B, L) inputs per call to amortize fixed pallas_call cost.
    padded_logits = pl.pallas_call(
        cnn_kernel,
        out_shape=jax.ShapeDtypeStruct((B, FEAT_PAD), jnp.float32),
        in_specs=[vmem] * 3,
        out_specs=vmem,
    )(ids, slab16, slab32)
    return padded_logits[:, :NUM_CLASSES]


def reference_forward(token_ids, emb_table, conv_ws, conv_bs, fc_w, fc_b):
    """Pure-JAX reference mirroring the PyTorch forward (NCW conv)."""
    embedded = emb_table[token_ids].astype(jnp.float32)             # (B, L, E)
    x = jnp.transpose(embedded, (0, 2, 1))                          # (B, E, L)
    feats = []
    for w, b in zip(conv_ws, conv_bs):
        y = jax.lax.conv_general_dilated(
            x, w.astype(jnp.float32), window_strides=(1,), padding='VALID',
            dimension_numbers=('NCH', 'OIH', 'NCH'))
        y = y + b.reshape(1, -1, 1)
        y = jnp.maximum(y, 0.0)
        feats.append(jnp.max(y, axis=2))
    combined = jnp.concatenate(feats, axis=1)
    return combined @ fc_w.T + fc_b


if __name__ == "__main__":
    key = jax.random.PRNGKey(0)
    keys = jax.random.split(key, 3 + 2 * len(FILTER_SIZES) + 2)

    # Deterministic synthetic parameters (shapes from the module's __init__).
    emb_table = 0.1 * jax.random.normal(keys[0], (VOCAB_SIZE, EMBED_DIM),
                                        jnp.float32)
    conv_ws, conv_bs = [], []
    for i, fs in enumerate(FILTER_SIZES):
        conv_ws.append(0.1 * jax.random.normal(
            keys[1 + 2 * i], (NUM_FILTERS, EMBED_DIM, fs), jnp.float32))
        conv_bs.append(0.1 * jax.random.normal(
            keys[2 + 2 * i], (NUM_FILTERS,), jnp.float32))
    fc_w = 0.1 * jax.random.normal(keys[-2], (NUM_CLASSES, FEAT_DIM),
                                   jnp.float32)
    fc_b = 0.1 * jax.random.normal(keys[-1], (NUM_CLASSES,), jnp.float32)

    # The kernel uses bf16 MXU operands for the embedding table and conv
    # weights (native fast path on v5e/v6e/v7x); snap the reference to the
    # same parameter values so only f32 accumulation order differs.
    emb_table = emb_table.astype(jnp.bfloat16).astype(jnp.float32)
    conv_ws = [w.astype(jnp.bfloat16).astype(jnp.float32) for w in conv_ws]

    # Deterministic example input: integer token ids (B, L).
    token_ids = jax.random.randint(jax.random.PRNGKey(0), (BATCH, SEQ_LEN),
                                   0, VOCAB_SIZE, dtype=jnp.int32)

    logits = jax.block_until_ready(
        cnn_forward(token_ids, emb_table, conv_ws, conv_bs, fc_w, fc_b))
    ref = jax.block_until_ready(
        reference_forward(token_ids, emb_table, conv_ws, conv_bs, fc_w, fc_b))

    assert logits.shape == (BATCH, NUM_CLASSES)
    assert jnp.allclose(logits, ref, rtol=1e-3, atol=1e-3), (logits, ref)

    print("KERNEL_OK")
</pallas_src>

<mosaic_0001>
module attributes {stable_mosaic.version = 11 : i64} {
  func.func @cnn_kernel(%arg0: memref<32x1xi32, #tpu.memory_space<vmem>>, %arg1: memref<768x128xbf16, #tpu.memory_space<vmem>>, %arg2: memref<176x128xf32, #tpu.memory_space<vmem>>, %arg3: memref<2x128xf32, #tpu.memory_space<vmem>>) attributes {dimension_semantics = [], scalar_prefetch = 0 : i64, scratch_operands = 0 : i64, tpu.core_type = #tpu.core_type<tc>} {
    %0 = tpu.iota {dimensions = array<i32: 1>} : vector<32x128xi32>
    %c0 = arith.constant 0 : index
    %c0_0 = arith.constant 0 : index
    %1 = vector.load %arg0[%c0, %c0_0] : memref<32x1xi32, #tpu.memory_space<vmem>>, vector<32x1xi32>
    %2 = vector.broadcast %1 : vector<32x1xi32> to vector<32x128xi32>
    %3 = arith.cmpi eq, %0, %2 : vector<32x128xi32>
    %cst = arith.constant 1.000000e+00 : f32
    %cst_1 = arith.constant 0.000000e+00 : f32
    %4 = vector.broadcast %cst : f32 to vector<32x128xf32>
    %5 = vector.broadcast %cst_1 : f32 to vector<32x128xf32>
    %6 = arith.select %3, %4, %5 : vector<32x128xi1>, vector<32x128xf32>
    %7 = arith.truncf %6 : vector<32x128xf32> to vector<32x128xbf16>
    %c0_2 = arith.constant 0 : index
    %c0_3 = arith.constant 0 : index
    %8 = vector.load %arg1[%c0_2, %c0_3] : memref<768x128xbf16, #tpu.memory_space<vmem>>, vector<128x128xbf16>
    %cst_4 = arith.constant dense<0.000000e+00> : vector<32x128xf32>
    %9 = tpu.matmul %7, %8, %cst_4 {dimension_numbers = #tpu.dot_dimension_numbers<[1], [0], [0], [1], [0, 0, 1, 1], [], []>} : vector<32x128xbf16>, vector<128x128xbf16>, vector<32x128xf32> -> vector<32x128xf32>
    %10 = arith.truncf %9 : vector<32x128xf32> to vector<32x128xbf16>
    %c128 = arith.constant 128 : index
    %c0_5 = arith.constant 0 : index
    %11 = vector.load %arg1[%c128, %c0_5] : memref<768x128xbf16, #tpu.memory_space<vmem>>, vector<128x128xbf16>
    %cst_6 = arith.constant dense<0.000000e+00> : vector<32x128xf32>
    %12 = tpu.matmul %10, %11, %cst_6 {dimension_numbers = #tpu.dot_dimension_numbers<[1], [0], [0], [1], [0, 0, 1, 1], [], []>} : vector<32x128xbf16>, vector<128x128xbf16>, vector<32x128xf32> -> vector<32x128xf32>
    %c31_i32 = arith.constant 31 : i32
    %13 = tpu.dynamic_rotate %9 by %c31_i32 dim 0 : vector<32x128xf32>, i32 -> vector<32x128xf32>
    %14 = arith.truncf %13 : vector<32x128xf32> to vector<32x128xbf16>
    %c256 = arith.constant 256 : index
    %c0_7 = arith.constant 0 : index
    %15 = vector.load %arg1[%c256, %c0_7] : memref<768x128xbf16, #tpu.memory_space<vmem>>, vector<128x128xbf16>
    %cst_8 = arith.constant dense<0.000000e+00> : vector<32x128xf32>
    %16 = tpu.matmul %14, %15, %cst_8 {dimension_numbers = #tpu.dot_dimension_numbers<[1], [0], [0], [1], [0, 0, 1, 1], [], []>} : vector<32x128xbf16>, vector<128x128xbf16>, vector<32x128xf32> -> vector<32x128xf32>
    %17 = arith.addf %12, %16 : vector<32x128xf32>
    %c30_i32 = arith.constant 30 : i32
    %18 = tpu.dynamic_rotate %9 by %c30_i32 dim 0 : vector<32x128xf32>, i32 -> vector<32x128xf32>
    %19 = arith.truncf %18 : vector<32x128xf32> to vector<32x128xbf16>
    %c384 = arith.constant 384 : index
    %c0_9 = arith.constant 0 : index
    %20 = vector.load %arg1[%c384, %c0_9] : memref<768x128xbf16, #tpu.memory_space<vmem>>, vector<128x128xbf16>
    %cst_10 = arith.constant dense<0.000000e+00> : vector<32x128xf32>
    %21 = tpu.matmul %19, %20, %cst_10 {dimension_numbers = #tpu.dot_dimension_numbers<[1], [0], [0], [1], [0, 0, 1, 1], [], []>} : vector<32x128xbf16>, vector<128x128xbf16>, vector<32x128xf32> -> vector<32x128xf32>
    %22 = arith.addf %17, %21 : vector<32x128xf32>
    %c29_i32 = arith.constant 29 : i32
    %23 = tpu.dynamic_rotate %9 by %c29_i32 dim 0 : vector<32x128xf32>, i32 -> vector<32x128xf32>
    %24 = arith.truncf %23 : vector<32x128xf32> to vector<32x128xbf16>
    %c512 = arith.constant 512 : index
    %c0_11 = arith.constant 0 : index
    %25 = vector.load %arg1[%c512, %c0_11] : memref<768x128xbf16, #tpu.memory_space<vmem>>, vector<128x128xbf16>
    %cst_12 = arith.constant dense<0.000000e+00> : vector<32x128xf32>
    %26 = tpu.matmul %24, %25, %cst_12 {dimension_numbers = #tpu.dot_dimension_numbers<[1], [0], [0], [1], [0, 0, 1, 1], [], []>} : vector<32x128xbf16>, vector<128x128xbf16>, vector<32x128xf32> -> vector<32x128xf32>
    %27 = arith.addf %22, %26 : vector<32x128xf32>
    %c28_i32 = arith.constant 28 : i32
    %28 = tpu.dynamic_rotate %9 by %c28_i32 dim 0 : vector<32x128xf32>, i32 -> vector<32x128xf32>
    %29 = arith.truncf %28 : vector<32x128xf32> to vector<32x128xbf16>
    %c640 = arith.constant 640 : index
    %c0_13 = arith.constant 0 : index
    %30 = vector.load %arg1[%c640, %c0_13] : memref<768x128xbf16, #tpu.memory_space<vmem>>, vector<128x128xbf16>
    %cst_14 = arith.constant dense<0.000000e+00> : vector<32x128xf32>
    %31 = tpu.matmul %29, %30, %cst_14 {dimension_numbers = #tpu.dot_dimension_numbers<[1], [0], [0], [1], [0, 0, 1, 1], [], []>} : vector<32x128xbf16>, vector<128x128xbf16>, vector<32x128xf32> -> vector<32x128xf32>
    %32 = arith.addf %27, %31 : vector<32x128xf32>
    %c0_15 = arith.constant 0 : index
    %c0_16 = arith.constant 0 : index
    %33 = vector.load %arg2[%c0_15, %c0_16] : memref<176x128xf32, #tpu.memory_space<vmem>>, vector<1x128xf32>
    %34 = vector.broadcast %33 : vector<1x128xf32> to vector<32x128xf32>
    %35 = arith.addf %32, %34 : vector<32x128xf32>
    %cst_17 = arith.constant 0.000000e+00 : f32
    %36 = vector.broadcast %cst_17 : f32 to vector<32x128xf32>
    %37 = arith.maximumf %35, %36 : vector<32x128xf32>
    %c144 = arith.constant 144 : index
    %c0_18 = arith.constant 0 : index
    %38 = vector.load %arg2[%c144, %c0_18] : memref<176x128xf32, #tpu.memory_space<vmem>>, vector<32x128xf32>
    %39 = arith.mulf %37, %38 : vector<32x128xf32>
    %40 = vector.shape_cast %39 : vector<32x128xf32> to vector<2x16x128xf32>
    %cst_19 = arith.constant dense<0xFF800000> : vector<2x128xf32>
    %41 = vector.multi_reduction <maximumf>, %40, %cst_19 [1] : vector<2x16x128xf32> to vector<2x128xf32>
    %c8 = arith.constant 8 : index
    %c0_20 = arith.constant 0 : index
    %42 = vector.load %arg2[%c8, %c0_20] : memref<176x128xf32, #tpu.memory_space<vmem>>, vector<128x128xf32>
    %cst_21 = arith.constant dense<0.000000e+00> : vector<2x128xf32>
    %43 = tpu.matmul %41, %42, %cst_21 {dimension_numbers = #tpu.dot_dimension_numbers<[1], [0], [0], [1], [0, 0, 1, 1], [], []>} : vector<2x128xf32>, vector<128x128xf32>, vector<2x128xf32> -> vector<2x128xf32>
    %c136 = arith.constant 136 : index
    %c0_22 = arith.constant 0 : index
    %44 = vector.load %arg2[%c136, %c0_22] : memref<176x128xf32, #tpu.memory_space<vmem>>, vector<1x128xf32>
    %45 = vector.broadcast %44 : vector<1x128xf32> to vector<2x128xf32>
    %46 = arith.addf %43, %45 : vector<2x128xf32>
    %c0_23 = arith.constant 0 : index
    %c0_24 = arith.constant 0 : index
    %47 = vector.load %arg3[%c0_23, %c0_24] : memref<2x128xf32, #tpu.memory_space<vmem>>, vector<2x128xf32>
    tpu.vector_store %arg3[%c0_23, %c0_24], %46 {strides = array<i32>} : memref<2x128xf32, #tpu.memory_space<vmem>>, vector<2x128xf32>,
    return
  }
}

</mosaic_0001>

<bundles_post_ra>
// kernel: tpu_custom_call.1
= control target key start
LH: loop header
LB: loop body
LE: loop exit
PB: predicated region body
PF: predicated region fallthrough
CT: control target
= control target key end

     0   :  { %8 = vsyncpa [#allocation3], 0  ;;  %s1522_s0 = inlined_call_operand.vmem [shape: s32[32,1], index: 0, kind: input, shape index: {}]   ;;  %s1523_s1 = inlined_call_operand.hbm [shape: bf16[768,128], index: 1, kind: input, shape index: {}]   ;;  %s1524_s2 = inlined_call_operand.hbm [shape: f32[176,128], index: 2, kind: input, shape index: {}]   ;;  %s1525_s3 = inlined_call_operand.hbm [shape: f32[2,128], index: 3, kind: output, shape index: {}]  }
   0x1   :  { %9 = vsyncpa [#allocation6], 0 }
   0x2   :  { %10 = vsyncpa [#allocation4], 0  ;;  %s1371_s12 = smov [#allocation2]  }
   0x3   :  { %s18_s13 = sshll.u32 %s1371_s12, 4  ;;  %s19_s13 = int_to_ptr.vmem [resolvable:$true] %s18_s13 }
   0x4   :  { %s1313_s14 = scalar_lea.vmem %s19_s13, 6144  ;;  %p1318_p1 = scmp.lt.s32.totalorder %s19_s13, %s19_s13 }
   0x5   :  { %p1314_p0 = scmp.ne.s32.totalorder %s19_s13, %s1313_s14  ;;  %p1319_p2 = scmp.lt.s32.totalorder %s1313_s14, %s1313_s14 }
   0x7   :  { %p1320_p3 = por %p1319_p2, %p1318_p1 }
   0x9   :  { %p1321_p4 = pnand %p1320_p3, %p1314_p0 }
   0xb   :  { %1324 = shalt.err (!%p1321_p4)
}
   0xc   :  { %s1372_s15 = smov 64   ;;  %s1373_s16 = smov 4  }
   0xd   :  { %24 = dma.hbm_to_vmem [thread:$0]  %s1523_s1, 6144, %s19_s13, [#allocation3], %s1372_s15, %s1372_s15, %s1373_s16  }
   0xe   :  { %s1374_s19 = smov [#allocation5]  }
   0xf   :  { %s30_s20 = sshll.u32 %s1374_s19, 4  ;;  %s31_s20 = int_to_ptr.vmem [resolvable:$true] %s30_s20 }
  0x10   :  { %s1333_s21 = scalar_lea.vmem %s31_s20, 2816  ;;  %p1338_p6 = scmp.lt.s32.totalorder %s31_s20, %s31_s20 }
  0x11   :  { %p1334_p5 = scmp.ne.s32.totalorder %s31_s20, %s1333_s21  ;;  %p1339_p7 = scmp.lt.s32.totalorder %s1333_s21, %s1333_s21 }
  0x13   :  { %p1340_p8 = por %p1339_p7, %p1338_p6 }
  0x15   :  { %p1341_p9 = pnand %p1340_p8, %p1334_p5 }
  0x17   :  { %1344 = shalt.err (!%p1341_p9)
}
  0x18   :  { %s1375_s22 = smov 128   ;;  %s1376_s23 = smov 8  }
  0x19   :  { %36 = dma.hbm_to_vmem [thread:$0]  %s1524_s2, 2816, %s31_s20, [#allocation6], %s1375_s22, %s1375_s22, %s1376_s23  }
  0x1a   :  { %1365 = dma.done.wait [#allocation3], 6144  }
  0x1b   :  { %1366 = vsyncadd [#allocation3], 4294961152 }
  0x1c   :  { %1367 = dma.done.wait [#allocation6], 2816  }
  0x1d   :  { %1368 = vsyncadd [#allocation6], 4294964480  ;;  %v1377_v0 = vmov 0   ;;  %v48_v1 = vld [vmem:[%s1522_s0 + $0x10] sm:$0xff]  ;;  %v46_v2 = vld [vmem:[%s1522_s0] sm:$0xff]  ;;  %v44_v19 = vlaneseq  ;;  %vm1380_vm10 = vmmov 0  }
  0x1e   :  { %1256 = vset.pattern.permute.xlu1 %v1377_v0  ;;  %1255 = vset.pattern.permute.xlu0 %v1377_v0  ;;  %v49_v3 = vld [vmem:[%s1522_s0 + $0x18] sm:$0xff]  ;;  %v47_v4 = vld [vmem:[%s1522_s0 + $0x8] sm:$0xff]  ;;  %v1258_v6 = vld [vmem:[#allocation2 + $0x30] sm:$0xff]   ;;  %v1378_v26 = vmov 1.0|1.0   ;;  %vm868_vm11 = vcmask 1041409  }
  0x1f   :  { %57 = vperm.xlu1 %1256, %v48_v1   ;;  %51 = vperm.xlu0 %1255, %v46_v2   ;;  %v1257_v5 = vld [vmem:[#allocation2 + $0x38] sm:$0xff]   ;;  %v1259_v7 = vld [vmem:[#allocation2 + $0x28] sm:$0xff]   ;;  %v1260_v8 = vld [vmem:[#allocation2 + $0x20] sm:$0xff]   ;;  %v45_v22 = vand.u32 127, %v44_v19  ;;  %v1420_v38 = vshrl.u32 %v44_v19, 7  ;;  %s1381_s0 = smov [#allocation7]  }
  0x20   :  { %1089 = vmatprep.subr.bf16.mxu0 %v1257_v5  ;;  %v1266_v9 = vld [vmem:[#allocation2 + $0xb8] sm:$0xff]   ;;  %v1268_v10 = vld [vmem:[#allocation2 + $0xb0] sm:$0xff]   ;;  %v1270_v12 = vld [vmem:[#allocation2 + $0xa8] sm:$0xff]   ;;  %s948_s5 = sshll.u32 %s1381_s0, 4  ;;  %s949_s5 = int_to_ptr.vmem [resolvable:$true] %s948_s5 }
  0x21   :  { %1090 = vmatpush3.bf16.msra.mxu0 %v1257_v5  ;;  %1109 = vmatprep.subr.bf16.mxu1 %v1266_v9  ;;  %v1261_v11 = vld [vmem:[#allocation2 + $0x18] sm:$0xff]   ;;  %v1262_v13 = vld [vmem:[#allocation2 + $0x10] sm:$0xff]   ;;  %v1272_v14 = vld [vmem:[#allocation2 + $0xa0] sm:$0xff]   ;;  %vm209_vm6 = vcmp.lt.s32.totalorder %v1420_v38, 7  ;;  %vm558_vm7 = vcmp.lt.s32.totalorder %v1420_v38, 5  ;;  %vm430_vm8 = vcmp.lt.s32.totalorder %v1420_v38, 6  ;;  %p1350_p11 = scmp.lt.s32.totalorder %s949_s5, %s949_s5 }
  0x22   :  { %1091 = vmatprep.subr.bf16.mxu0 %v1258_v6  ;;  %1110 = vmatpush3.bf16.msra.mxu1 %v1266_v9  ;;  %v1263_v15 = vld [vmem:[#allocation2 + $0x8] sm:$0xff]   ;;  %v1274_v16 = vld [vmem:[#allocation2 + $0x98] sm:$0xff]   ;;  %v1264_v17 = vld [vmem:[#allocation2] sm:$0xff]   ;;  %vm686_vm9 = vcmp.lt.s32.totalorder %v1420_v38, 4  ;;  %s1345_s6 = scalar_lea.vmem %s949_s5, 32 }
  0x23   :  { %60 = vperm.xlu1 %1256, %v49_v3   ;;  %54 = vperm.xlu0 %1255, %v47_v4   ;;  %v1265_v18 = vld [vmem:[#allocation2 + $0x78] sm:$0xff]   ;;  %v1267_v25 = vld [vmem:[#allocation2 + $0x70] sm:$0xff]   ;;  %v1269_v27 = vld [vmem:[#allocation2 + $0x68] sm:$0xff]   ;;  %p1346_p10 = scmp.ne.s32.totalorder %s949_s5, %s1345_s6  ;;  %p1351_p12 = scmp.lt.s32.totalorder %s1345_s6, %s1345_s6 }
  0x24   :  { %1111 = vmatprep.subr.bf16.mxu1 %v1268_v10  ;;  %v1271_v28 = vld [vmem:[#allocation2 + $0x60] sm:$0xff]   ;;  %v1273_v29 = vld [vmem:[#allocation2 + $0x58] sm:$0xff]   ;;  %v1275_v30 = vld [vmem:[#allocation2 + $0x50] sm:$0xff]  }
  0x25   :  { %1092 = vmatpush3.bf16.msra.mxu0 %v1258_v6  ;;  %v1276_v31 = vld [vmem:[#allocation2 + $0x90] sm:$0xff]   ;;  %v1277_v32 = vld [vmem:[#allocation2 + $0x48] sm:$0xff]   ;;  %v1279_v34 = vld [vmem:[#allocation2 + $0x40] sm:$0xff]   ;;  %p1352_p13 = por %p1351_p12, %p1350_p11 }
  0x26   :  { %1093 = vmatprep.subr.bf16.mxu0 %v1259_v7  ;;  %1112 = vmatpush3.bf16.msra.mxu1 %v1268_v10  ;;  %v1278_v33 = vld [vmem:[#allocation2 + $0x88] sm:$0xff]   ;;  %v1280_v35 = vld [vmem:[#allocation2 + $0x80] sm:$0xff]   ;;  %v1281_v36 = vld [vmem:[#allocation2 + $0x138] sm:$0xff]  }
  0x27   :  { %1113 = vmatprep.subr.bf16.mxu1 %v1270_v12  ;;  %v1282_v37 = vld [vmem:[#allocation2 + $0xf8] sm:$0xff]   ;;  %v1283_v57 = vld [vmem:[#allocation2 + $0x130] sm:$0xff]   ;;  %v1293_v19 = vld [vmem:[#allocation2 + $0x108] sm:$0xff]   ;;  %p1353_p0 = pnand %p1352_p13, %p1346_p10 }
  0x28   :  { %v1284_v6 = vld [vmem:[#allocation2 + $0xf0] sm:$0xff]  }
  0x29   :  { %1094 = vmatpush3.bf16.msra.mxu0 %v1259_v7  ;;  %v1302_v38 = vld [vmem:[#allocation2 + $0x150] sm:$0xff]  }
  0x2a   :  { %1095 = vmatprep.subr.bf16.mxu0 %v1260_v8  ;;  %1114 = vmatpush3.bf16.msra.mxu1 %v1270_v12  ;;  %v1286_v12 = vld [vmem:[#allocation2 + $0xe8] sm:$0xff]  }
  0x2b   :  { %1115 = vmatprep.subr.bf16.mxu1 %v1272_v14 }
  0x2d   :  { %1096 = vmatpush3.bf16.msra.mxu0 %v1260_v8  ;;  %v1285_v8 = vld [vmem:[#allocation2 + $0x128] sm:$0xff]  }
  0x2e   :  { %1097 = vmatprep.subr.bf16.mxu0 %v1261_v11  ;;  %1116 = vmatpush3.bf16.msra.mxu1 %v1272_v14  ;;  %v1288_v14 = vld [vmem:[#allocation2 + $0xe0] sm:$0xff]  }
  0x2f   :  { %1117 = vmatprep.subr.bf16.mxu1 %v1274_v16 }
  0x31   :  { %1098 = vmatpush3.bf16.msra.mxu0 %v1261_v11 }
  0x32   :  { %1099 = vmatprep.subr.bf16.mxu0 %v1262_v13  ;;  %1118 = vmatpush3.bf16.msra.mxu1 %v1274_v16  ;;  %v1290_v16 = vld [vmem:[#allocation2 + $0xd8] sm:$0xff]  }
  0x33   :  { %1119 = vmatprep.subr.bf16.mxu1 %v1276_v31 }
  0x35   :  { %1100 = vmatpush3.bf16.msra.mxu0 %v1262_v13  ;;  %v1287_v13 = vld [vmem:[#allocation2 + $0x120] sm:$0xff]  }
  0x36   :  { %1101 = vmatprep.subr.bf16.mxu0 %v1263_v15  ;;  %1120 = vmatpush3.bf16.msra.mxu1 %v1276_v31 }
  0x37   :  { %1121 = vmatprep.subr.bf16.mxu1 %v1278_v33 }
  0x39   :  { %1102 = vmatpush3.bf16.msra.mxu0 %v1263_v15  ;;  %v1289_v15 = vld [vmem:[#allocation2 + $0x118] sm:$0xff]  }
  0x3a   :  { %1103 = vmatprep.subr.bf16.mxu0 %v1264_v17  ;;  %1122 = vmatpush3.bf16.msra.mxu1 %v1278_v33 }
  0x3b   :  { %1123 = vmatprep.subr.bf16.mxu1 %v1280_v35 }
  0x3d   :  { %1104 = vmatpush3.bf16.msra.mxu0 %v1264_v17  ;;  %v1291_v17 = vld [vmem:[#allocation2 + $0x110] sm:$0xff]  }
  0x3e   :  { %1129 = vmatprep.subr.bf16.mxu0 %v1265_v18  ;;  %1124 = vmatpush3.bf16.msra.mxu1 %v1280_v35  ;;  %v1298_v35 = vld [vmem:[#allocation2 + $0x170] sm:$0xff]  }
  0x3f   :  { %1149 = vmatprep.subr.bf16.mxu1 %v1282_v37 }
  0x9a   :  { %v58_v20 = vpop.permute.xlu1 %57  ;;  %v52_v21 = vpop.permute.xlu0 %51 }
  0x9b   :  { %vm64_vm0 = vcmp.eq.s32.totalorder %v45_v22, %v58_v20  ;;  %vm62_vm3 = vcmp.eq.s32.totalorder %v45_v22, %v52_v21  ;;  %v1294_v20 = vld [vmem:[#allocation2 + $0xc8] sm:$0xff]   ;;  %v1295_v21 = vld [vmem:[#allocation2 + $0x100] sm:$0xff]  }
  0x9e   :  { %v61_v23 = vpop.permute.xlu1 %60  ;;  %v55_v24 = vpop.permute.xlu0 %54 }
  0x9f   :  { %vm65_vm1 = vcmp.eq.s32.totalorder %v45_v22, %v61_v23  ;;  %vm63_vm2 = vcmp.eq.s32.totalorder %v45_v22, %v55_v24  ;;  %v1296_v23 = vld [vmem:[#allocation2 + $0xc0] sm:$0xff]  }
  0xa0   :  { %vm968_vm4 = vmpackc.low %vm65_vm1, %vm64_vm0 }
  0xa1   :  { %vm966_vm5 = vmpackc.low %vm63_vm2, %vm62_vm3 }
  0xa2   :  { %1105 = vmatprep.mubr.msk.bf16.mxu0 %vm966_vm5, %v1378_v26 }
  0xa3   :  { %1106 = vmatmul.mubr.msk.bf16.vlgmr.msra.gmra.mxu0 %vm968_vm4, %v1378_v26 }
  0xa4   :  { %1130 = vmatpush3.bf16.msra.mxu0 %v1265_v18  ;;  %v1292_v18 = vld [vmem:[#allocation2 + $0xd0] sm:$0xff]  }
  0xa5   :  { %1131 = vmatprep.subr.bf16.mxu0 %v1267_v25 }
  0xa8   :  { %1132 = vmatpush3.bf16.msra.mxu0 %v1267_v25 }
  0xa9   :  { %1133 = vmatprep.subr.bf16.mxu0 %v1269_v27 }
  0xac   :  { %1134 = vmatpush3.bf16.msra.mxu0 %v1269_v27 }
  0xad   :  { %1135 = vmatprep.subr.bf16.mxu0 %v1271_v28 }
  0xb0   :  { %1136 = vmatpush3.bf16.msra.mxu0 %v1271_v28  ;;  %v1297_v28 = vld [vmem:[#allocation2 + $0x178] sm:$0xff]  }
  0xb1   :  { %1137 = vmatprep.subr.bf16.mxu0 %v1273_v29 }
  0xb4   :  { %1138 = vmatpush3.bf16.msra.mxu0 %v1273_v29 }
  0xb5   :  { %1139 = vmatprep.subr.bf16.mxu0 %v1275_v30 }
  0xb8   :  { %1140 = vmatpush3.bf16.msra.mxu0 %v1275_v30 }
  0xb9   :  { %1141 = vmatprep.subr.bf16.mxu0 %v1277_v32 }
  0xbc   :  { %1142 = vmatpush3.bf16.msra.mxu0 %v1277_v32 }
  0xbd   :  { %1143 = vmatprep.subr.bf16.mxu0 %v1279_v34 }
  0xc0   :  { %1144 = vmatpush3.bf16.msra.mxu0 %v1279_v34 }
  0xc1   :  { %1169 = vmatprep.subr.bf16.mxu0 %v1281_v36 }
 0x163   :  { %v1422_v39 = vpop.f32.mrf.mxu0 }
 0x164   :  { %v428_v42 = vrot.slane %v1422_v39, 2  ;;  %v556_v44 = vrot.slane %v1422_v39, 3  ;;  %v205_v48 = vrot.slane %v1422_v39, 1  ;;  %v684_v2 = vrot.slane %v1422_v39, 4 }
 0x165   :  { %v1424_v40 = vpop.f32.mrf.mxu0 }
 0x166   :  { %v426_v45 = vrot.slane %v1424_v40, 2  ;;  %v554_v46 = vrot.slane %v1424_v40, 3  ;;  %v203_v52 = vrot.slane %v1424_v40, 1  ;;  %v682_v3 = vrot.slane %v1424_v40, 4 }
 0x167   :  { %v1426_v41 = vpop.f32.mrf.mxu0 }
 0x168   :  { %v206_v43 = vrot.slane %v1426_v41, 1  ;;  %v685_v53 = vrot.slane %v1426_v41, 4  ;;  %v186_v54 = vpack.c.bf16 %v1426_v41, %v1422_v39  ;;  %v557_v22 = vrot.slane %v1426_v41, 3  ;;  %v1300_v39 = vld [vmem:[#allocation2 + $0x160] sm:$0xff]  }
 0x169   :  { %v1437_v47 = vpop.f32.mrf.mxu0  ;;  %v429_v24 = vrot.slane %v1426_v41, 2  ;;  %v1303_v41 = vld [vmem:[#allocation2 + $0x148] sm:$0xff]  }
 0x16a   :  { %v427_v49 = vrot.slane %v1437_v47, 2  ;;  %v555_v50 = vrot.slane %v1437_v47, 3  ;;  %v185_v51 = vpack.c.bf16 %v1437_v47, %v1424_v40  ;;  %v204_v55 = vrot.slane %v1437_v47, 1  ;;  %v1301_v40 = vld [vmem:[#allocation2 + $0x158] sm:$0xff]  }
 0x16b   :  { %v210_v56 = vsel %vm209_vm6, %v205_v48, %v206_v43  ;;  %v213_v60 = vsel %vm209_vm6, %v206_v43, %v203_v52  ;;  %v1479_v9 = vsel %vm686_vm9, %v684_v2, %v685_v53  ;;  %v1485_v10 = vsel %vm686_vm9, %v685_v53, %v682_v3  ;;  %v860_v43 = vld [vmem:[#allocation5 + $0x80] sm:$0xff]  ;;  %v851_v53 = vld [vmem:[#allocation5 + $0x38] sm:$0xff] }
 0x16c   :  { %1145 = vmatprep.mubr.bf16.mxu0 %v185_v51  ;;  %v560_v58 = vsel %vm558_vm7, %v555_v50, %v556_v44  ;;  %v561_v59 = vsel %vm558_vm7, %v554_v46, %v555_v50  ;;  %v432_v61 = vsel %vm430_vm8, %v427_v49, %v428_v42  ;;  %v211_v62 = vsel %vm209_vm6, %v204_v55, %v205_v48  ;;  %v856_v48 = vld [vmem:[#allocation5 + $0x60] sm:$0xff]  ;;  %v854_v50 = vld [vmem:[#allocation5 + $0x50] sm:$0xff]  ;;  %v853_v51 = vld [vmem:[#allocation5 + $0x48] sm:$0xff] }
 0x16d   :  { %1146 = vmatmul.mubr.bf16.vlgmr.msra.gmra.mxu0 %v186_v54  ;;  %v212_v63 = vsel %vm209_vm6, %v203_v52, %v204_v55  ;;  %v563_v0 = vpack.c.bf16 %v560_v58, %v561_v59  ;;  %v433_v1 = vsel %vm430_vm8, %v426_v45, %v427_v49  ;;  %v215_v5 = vpack.c.bf16 %v213_v60, %v210_v56  ;;  %v855_v49 = vld [vmem:[#allocation5 + $0x58] sm:$0xff]  ;;  %v852_v52 = vld [vmem:[#allocation5 + $0x40] sm:$0xff]  ;;  %v850_v54 = vld [vmem:[#allocation5 + $0x30] sm:$0xff] }
 0x16e   :  { %1170 = vmatpush3.bf16.msra.mxu0 %v1281_v36  ;;  %v214_v4 = vpack.c.bf16 %v211_v62, %v212_v63  ;;  %v435_v7 = vpack.c.bf16 %v432_v61, %v433_v1  ;;  %v692_v11 = vpack.c.bf16 %v1485_v10, %v1479_v9  ;;  %v683_v25 = vrot.slane %v1437_v47, 4  ;;  %v857_v47 = vld [vmem:[#allocation5 + $0x68] sm:$0xff]  ;;  %v848_v56 = vld [vmem:[#allocation5 + $0x20] sm:$0xff]  ;;  %v846_v58 = vld [vmem:[#allocation5 + $0x10] sm:$0xff] }
 0x16f   :  { %1185 = vmatprep.mubr.bf16.mxu0 %v563_v0  ;;  %1171 = vmatprep.subr.bf16.mxu0 %v1283_v57  ;;  %v559_v26 = vsel %vm558_vm7, %v556_v44, %v557_v22  ;;  %v562_v27 = vsel %vm558_vm7, %v557_v22, %v554_v46  ;;  %v431_v30 = vsel %vm430_vm8, %v428_v42, %v429_v24  ;;  %v1304_v42 = vld [vmem:[#allocation2 + $0x140] sm:$0xff]   ;;  %v1379_v44 = vmov 0.0   ;;  %v858_v46 = vld [vmem:[#allocation5 + $0x70] sm:$0xff]  ;;  %v849_v55 = vld [vmem:[#allocation5 + $0x28] sm:$0xff] }
 0x170   :  { %1125 = vmatprep.mubr.bf16.mxu1 %v214_v4  ;;  %v564_v29 = vpack.c.bf16 %v562_v27, %v559_v26  ;;  %v434_v31 = vsel %vm430_vm8, %v429_v24, %v426_v45  ;;  %v688_v32 = vsel %vm686_vm9, %v683_v25, %v684_v2  ;;  %v689_v33 = vsel %vm686_vm9, %v682_v3, %v683_v25  ;;  %v859_v45 = vld [vmem:[#allocation5 + $0x78] sm:$0xff]  ;;  %v845_v59 = vld [vmem:[#allocation5 + $0x8] sm:$0xff] }
 0x171   :  { %1126 = vmatmul.mubr.bf16.vlgmr.msra.gmra.mxu1 %v215_v5  ;;  %v436_v34 = vpack.c.bf16 %v434_v31, %v431_v30  ;;  %v691_v36 = vpack.c.bf16 %v688_v32, %v689_v33 }
 0x172   :  { %1150 = vmatpush3.bf16.msra.mxu1 %v1282_v37  ;;  %1165 = vmatprep.mubr.bf16.mxu1 %v435_v7  ;;  %v1299_v37 = vld [vmem:[#allocation2 + $0x168] sm:$0xff]  }
 0x173   :  { %1172 = vmatpush3.bf16.msra.mxu0 %v1283_v57  ;;  %1151 = vmatprep.subr.bf16.mxu1 %v1284_v6  ;;  %v847_v57 = vld [vmem:[#allocation5 + $0x18] sm:$0xff] }
 0x174   :  { %1173 = vmatprep.subr.bf16.mxu0 %v1285_v8 }
 0x176   :  { %1152 = vmatpush3.bf16.msra.mxu1 %v1284_v6 }
 0x177   :  { %1174 = vmatpush3.bf16.msra.mxu0 %v1285_v8  ;;  %1153 = vmatprep.subr.bf16.mxu1 %v1286_v12 }
 0x178   :  { %1175 = vmatprep.subr.bf16.mxu0 %v1287_v13 }
 0x17a   :  { %1154 = vmatpush3.bf16.msra.mxu1 %v1286_v12 }
 0x17b   :  { %1176 = vmatpush3.bf16.msra.mxu0 %v1287_v13  ;;  %1155 = vmatprep.subr.bf16.mxu1 %v1288_v14 }
 0x17c   :  { %1177 = vmatprep.subr.bf16.mxu0 %v1289_v15 }
 0x17e   :  { %1156 = vmatpush3.bf16.msra.mxu1 %v1288_v14 }
 0x17f   :  { %1178 = vmatpush3.bf16.msra.mxu0 %v1289_v15  ;;  %1157 = vmatprep.subr.bf16.mxu1 %v1290_v16 }
 0x180   :  { %1179 = vmatprep.subr.bf16.mxu0 %v1291_v17 }
 0x182   :  { %1158 = vmatpush3.bf16.msra.mxu1 %v1290_v16 }
 0x183   :  { %1180 = vmatpush3.bf16.msra.mxu0 %v1291_v17  ;;  %1159 = vmatprep.subr.bf16.mxu1 %v1292_v18 }
 0x184   :  { %1181 = vmatprep.subr.bf16.mxu0 %v1293_v19 }
 0x186   :  { %1160 = vmatpush3.bf16.msra.mxu1 %v1292_v18 }
 0x187   :  { %1182 = vmatpush3.bf16.msra.mxu0 %v1293_v19  ;;  %1161 = vmatprep.subr.bf16.mxu1 %v1294_v20 }
 0x188   :  { %1183 = vmatprep.subr.bf16.mxu0 %v1295_v21 }
 0x18a   :  { %1162 = vmatpush3.bf16.msra.mxu1 %v1294_v20  ;;  %v1010_v20 = vld [vmem:[#allocation5] ss:$0 sm:$0xff] }
 0x18b   :  { %1184 = vmatpush3.bf16.msra.mxu0 %v1295_v21  ;;  %1163 = vmatprep.subr.bf16.mxu1 %v1296_v23 }
 0x18c   :  { %1209 = vmatprep.subr.mxu0 %v1379_v44 }
 0x18e   :  { %1164 = vmatpush3.bf16.msra.mxu1 %v1296_v23  ;;  %1186 = vmatmul.mubr.bf16.vlgmr.msra.gmra.mxu0 %v564_v29 }
 0x18f   :  { %1189 = vmatprep.subr.bf16.mxu1 %v1297_v28  ;;  %1210 = vmatpush3.msra.mxu0 %v860_v43  ;;  %v824_v43 = vld [vmem:[#allocation5 + $0x98] sm:$0xff] }
 0x190   :  { %1211 = vmatprep.subr.mxu0 %v1379_v44  ;;  %1241 = vmatprep.mubr.msk.f32.mxu0 %vm1380_vm10, %v1379_v44 }
 0x191   :  { %1166 = vmatmul.mubr.bf16.vlgmr.msra.gmra.mxu1 %v436_v34  ;;  %1212 = vmatpush3.msra.mxu0 %v859_v45 }
 0x192   :  { %1190 = vmatpush3.bf16.msra.mxu1 %v1297_v28  ;;  %1205 = vmatprep.mubr.bf16.mxu1 %v691_v36 }
 0x193   :  { %1191 = vmatprep.subr.bf16.mxu1 %v1298_v35  ;;  %1213 = vmatprep.subr.mxu0 %v1379_v44 }
 0x194   :  { %1214 = vmatpush3.msra.mxu0 %v858_v46 }
 0x195   :  { %1215 = vmatprep.subr.mxu0 %v1379_v44 }
 0x196   :  { %1192 = vmatpush3.bf16.msra.mxu1 %v1298_v35  ;;  %1216 = vmatpush3.msra.mxu0 %v857_v47 }
 0x197   :  { %1193 = vmatprep.subr.bf16.mxu1 %v1299_v37  ;;  %1217 = vmatprep.subr.mxu0 %v1379_v44 }
 0x198   :  { %1218 = vmatpush3.msra.mxu0 %v856_v48 }
 0x199   :  { %1219 = vmatprep.subr.mxu0 %v1379_v44 }
 0x19a   :  { %1194 = vmatpush3.bf16.msra.mxu1 %v1299_v37  ;;  %1220 = vmatpush3.msra.mxu0 %v855_v49  ;;  %v825_v37 = vld [vmem:[#allocation5 + $0xa0] sm:$0xff] }
 0x19b   :  { %1195 = vmatprep.subr.bf16.mxu1 %v1300_v39  ;;  %1221 = vmatprep.subr.mxu0 %v1379_v44 }
 0x19c   :  { %1222 = vmatpush3.msra.mxu0 %v854_v50 }
 0x19d   :  { %1223 = vmatprep.subr.mxu0 %v1379_v44 }
 0x19e   :  { %1196 = vmatpush3.bf16.msra.mxu1 %v1300_v39  ;;  %1224 = vmatpush3.msra.mxu0 %v853_v51  ;;  %v826_v39 = vld [vmem:[#allocation5 + $0xa8] sm:$0xff] }
 0x19f   :  { %1197 = vmatprep.subr.bf16.mxu1 %v1301_v40  ;;  %1225 = vmatprep.subr.mxu0 %v1379_v44 }
 0x1a0   :  { %1226 = vmatpush3.msra.mxu0 %v852_v52 }
 0x1a1   :  { %1227 = vmatprep.subr.mxu0 %v1379_v44 }
 0x1a2   :  { %1198 = vmatpush3.bf16.msra.mxu1 %v1301_v40  ;;  %1228 = vmatpush3.msra.mxu0 %v851_v53 }
 0x1a3   :  { %1199 = vmatprep.subr.bf16.mxu1 %v1302_v38  ;;  %1229 = vmatprep.subr.mxu0 %v1379_v44 }
 0x1a4   :  { %1230 = vmatpush3.msra.mxu0 %v850_v54 }
 0x1a5   :  { %1231 = vmatprep.subr.mxu0 %v1379_v44 }
 0x1a6   :  { %1200 = vmatpush3.bf16.msra.mxu1 %v1302_v38  ;;  %1232 = vmatpush3.msra.mxu0 %v849_v55 }
 0x1a7   :  { %1201 = vmatprep.subr.bf16.mxu1 %v1303_v41  ;;  %1233 = vmatprep.subr.mxu0 %v1379_v44 }
 0x1a8   :  { %1234 = vmatpush3.msra.mxu0 %v848_v56 }
 0x1a9   :  { %1235 = vmatprep.subr.mxu0 %v1379_v44 }
 0x1aa   :  { %1202 = vmatpush3.bf16.msra.mxu1 %v1303_v41  ;;  %1236 = vmatpush3.msra.mxu0 %v847_v57 }
 0x1ab   :  { %1203 = vmatprep.subr.bf16.mxu1 %v1304_v42  ;;  %1237 = vmatprep.subr.mxu0 %v1379_v44 }
 0x1ac   :  { %1238 = vmatpush3.msra.mxu0 %v846_v58 }
 0x1ad   :  { %1239 = vmatprep.subr.mxu0 %v1379_v44 }
 0x1ae   :  { %1204 = vmatpush3.bf16.msra.mxu1 %v1304_v42  ;;  %1240 = vmatpush3.msra.mxu0 %v845_v59  ;;  %v823_v42 = vld [vmem:[#allocation5 + $0x90] sm:$0xff] }
 0x1b1   :  { %1206 = vmatmul.mubr.bf16.vlgmr.msra.gmra.mxu1 %v692_v11 }
 0x22d   :  { %v1147_v62 = vpop.f32.mrf.mxu0 }
 0x22f   :  { %v411_v0 = vpop.f32.mrf.mxu0 }
 0x231   :  { %v1127_v60 = vpop.f32.mrf.mxu1  ;;  %v1148_v2 = vpop.f32.mrf.mxu0 }
 0x232   :  { %v420_v7 = vadd.f32 %v1147_v62, %v1127_v60 }
 0x233   :  { %v314_v61 = vpop.f32.mrf.mxu1  ;;  %v414_v4 = vpop.f32.mrf.mxu0 }
 0x234   :  { %v412_v9 = vadd.f32 %v411_v0, %v314_v61  ;;  %v1011_v0 = vld [vmem:[#allocation5 + $0x88] ss:$0 sm:$0xff] }
 0x235   :  { %v1128_v63 = vpop.f32.mrf.mxu1 }
 0x236   :  { %v423_v12 = vadd.f32 %v1148_v2, %v1128_v63 }
 0x237   :  { %v317_v1 = vpop.f32.mrf.mxu1 }
 0x238   :  { %v415_v15 = vadd.f32 %v414_v4, %v317_v1 }
 0x24e   :  { %v1187_v6 = vpop.f32.mrf.mxu0 }
 0x250   :  { %v663_v11 = vpop.f32.mrf.mxu0 }
 0x251   :  { %v1167_v3 = vpop.f32.mrf.mxu1 }
 0x252   :  { %v552_v10 = vadd.f32 %v1167_v3, %v420_v7  ;;  %v1188_v18 = vpop.f32.mrf.mxu0 }
 0x253   :  { %v535_v5 = vpop.f32.mrf.mxu1 }
 0x254   :  { %v550_v13 = vadd.f32 %v535_v5, %v412_v9  ;;  %v680_v17 = vadd.f32 %v1187_v6, %v552_v10  ;;  %v666_v28 = vpop.f32.mrf.mxu0 }
 0x255   :  { %v1168_v8 = vpop.f32.mrf.mxu1 }
 0x256   :  { %v553_v16 = vadd.f32 %v1168_v8, %v423_v12  ;;  %v678_v23 = vadd.f32 %v663_v11, %v550_v13 }
 0x257   :  { %v538_v14 = vpop.f32.mrf.mxu1 }
 0x258   :  { %v551_v21 = vadd.f32 %v538_v14, %v415_v15  ;;  %v681_v27 = vadd.f32 %v1188_v18, %v553_v16 }
 0x25a   :  { %v679_v32 = vadd.f32 %v666_v28, %v551_v21 }
 0x271   :  { %v1207_v19 = vpop.f32.mrf.mxu1 }
 0x272   :  { %v808_v22 = vadd.f32 %v1207_v19, %v680_v17 }
 0x273   :  { %v791_v24 = vpop.f32.mrf.mxu1 }
 0x274   :  { %v817_v25 = vadd.f32 %v1010_v20, %v808_v22  ;;  %v806_v26 = vadd.f32 %v791_v24, %v678_v23 }
 0x275   :  { %v1208_v29 = vpop.f32.mrf.mxu1 }
 0x276   :  { %v815_v30 = vadd.f32 %v1010_v20, %v806_v26  ;;  %v809_v31 = vadd.f32 %v1208_v29, %v681_v27  ;;  %v821_v34 = vmax.f32 %v817_v25, 0.0 }
 0x277   :  { %v794_v33 = vpop.f32.mrf.mxu1 }
 0x278   :  { %v818_v35 = vadd.f32 %v1010_v20, %v809_v31  ;;  %v807_v36 = vadd.f32 %v794_v33, %v679_v32  ;;  %v819_v40 = vmax.f32 %v815_v30, 0.0  ;;  %v829_v44 = vmul.f32 %v825_v37, %v821_v34 }
 0x27a   :  { %v822_v38 = vmax.f32 %v818_v35, 0.0  ;;  %v816_v41 = vadd.f32 %v1010_v20, %v807_v36  ;;  %v827_v47 = vmul.f32 %v823_v42, %v819_v40 }
 0x27c   :  { %v830_v45 = vmul.f32 %v826_v39, %v822_v38  ;;  %v820_v46 = vmax.f32 %v816_v41, 0.0 }
 0x27e   :  { %v838_v48 = vmax.f32 %v829_v44, %v830_v45  ;;  %v828_v49 = vmul.f32 %v824_v43, %v820_v46 }
 0x280   :  { %v839_v50 = vrot.slane %v838_v48, 4  ;;  %v831_v51 = vmax.f32 %v827_v47, %v828_v49 }
 0x282   :  { %v840_v52 = vmax.f32 %v838_v48, %v839_v50  ;;  %v832_v53 = vrot.slane %v831_v51, 4 }
 0x284   :  { %v841_v54 = vrot.slane %v840_v52, 2  ;;  %v833_v55 = vmax.f32 %v831_v51, %v832_v53 }
 0x286   :  { %v834_v56 = vrot.slane %v833_v55, 2  ;;  %v842_v57 = vmax.f32 %v840_v52, %v841_v54 }
 0x288   :  { %v835_v58 = vmax.f32 %v833_v55, %v834_v56  ;;  %v843_v59 = vrot.slane %v842_v57, 1 }
 0x28a   :  { %v836_v60 = vrot.slane %v835_v58, 1  ;;  %v844_v62 = vmax.f32 %v842_v57, %v843_v59 }
 0x28c   :  { %v837_v61 = vmax.f32 %v835_v58, %v836_v60 }
 0x28e   :  { %v869_v63 = vsel %vm868_vm11, %v844_v62, %v837_v61 }
 0x28f   :  { %1242 = vmatmul.mubr.f32.vlgmr.msra.gmra.mxu0 %v869_v63 }
 0x34f   :  { %v937_v1 = vpop.f32.mrf.mxu0 }
 0x350   :  { %v938_v2 = vadd.f32 %v1011_v0, %v937_v1 }
 0x351   :  { %v1243_v3 = vpop.f32.mrf.mxu0 }
 0x352   :  { %941 = vst [vmem:[#allocation7] sm:$0x3] %v938_v2 }
 0x353   :  { %1356 = shalt.err (!%p1353_p0)
}
 0x354   :  { %951 = dma.vmem_to_hbm [thread:$0]  %s949_s5, 32, %s1525_s3, [#allocation4]  }
 0x355   :  { %1369 = dma.done.wait [#allocation4], 32  }
 0x356   :  { %1370 = vsyncadd [#allocation4], 4294967264 }
 0x357   :  { %955 = vsyncpa [#allocation3], 1 }
 0x358   :  { %956 = vsyncpa [#allocation6], 1 }
 0x359   :  { %957 = vsyncpa [#allocation4], 1 }

</bundles_post_ra>
